<compile_context>
chip_gen: v7x
topology: tpu7x:2x2x1
jax: 0.10.0
libtpu: 0.0.40
codegen_flags: <defaults>
</compile_context>

<pallas_src>
import functools

import jax
import jax.numpy as jnp
from jax import lax
from jax.experimental import pallas as pl
from jax.experimental.pallas import tpu as pltpu

LRELU_SLOPE = 0.1
HALO = 128          # lane-aligned halo; must cover sum_i ((K-1)//2) * dilation_i


def _round_up(x, m):
    return (x + m - 1) // m * m


def _shift_lanes(x, off):
    """result[:, t] = x[:, t + off] with window wraparound (static off).

    Wraparound is harmless: only columns at least `HALO` away from the window
    edges are ever consumed downstream, and HALO >= total dilation reach.
    """
    if off == 0:
        return x
    return jnp.concatenate([x[:, off:], x[:, :off]], axis=1)


def _resblock2_kernel(x_ref, xh_ref, m_ref, mh_ref,
                      w1_ref, b1_ref, w2_ref, b2_ref, o_ref,
                      *, dilations, kernel_size, halo):
    """One (batch, time-tile) grid step.

    x_ref : (1, C, TILE_T)       centre tile of the input
    xh_ref: (1, 1, C, 2*halo)    left/right halo columns for this tile
    m_ref : (1, 1, TILE_T)       mask centre tile (zero where time was padded)
    mh_ref: (1, 1, 1, 2*halo)    mask halo columns
    w*_ref: (C, K*C)             fused tap-major conv weights (VMEM resident)
    b*_ref: (C, 1)
    o_ref : (1, C, TILE_T)
    """
    C = x_ref.shape[1]
    tile_t = x_ref.shape[2]
    W = tile_t + 2 * halo
    K = kernel_size

    # Assemble the haloed window; every concat boundary is lane-aligned (128).
    xh = xh_ref[0, 0].astype(jnp.float32)                        # (C, 2*halo)
    xw = jnp.concatenate(
        [xh[:, :halo], x_ref[0].astype(jnp.float32), xh[:, halo:]], axis=1)
    mh = mh_ref[0, 0].astype(jnp.float32)                        # (1, 2*halo)
    mw = jnp.concatenate(
        [mh[:, :halo], m_ref[0].astype(jnp.float32), mh[:, halo:]], axis=1)
    m_b = jnp.broadcast_to(mw, (C, W))       # hoisted mask broadcast (reused 3x)

    def conv_stage(xin, w_ref, b_ref, d):
        xt = jnp.where(xin >= 0, xin, LRELU_SLOPE * xin)         # leaky_relu
        xt = xt * m_b                                            # conv zero-padding
        # K shifted copies stacked on the sublane axis -> one K*C-deep matmul.
        parts = [_shift_lanes(xt, (k - (K - 1) // 2) * d) for k in range(K)]
        stacked = jnp.concatenate(parts, axis=0)                 # (K*C, W)
        y = jnp.dot(w_ref[...], stacked,
                    preferred_element_type=jnp.float32,
                    precision=lax.Precision.HIGHEST)
        return y + b_ref[...]

    x = xw
    for w_ref, b_ref, d in ((w1_ref, b1_ref, dilations[0]),
                            (w2_ref, b2_ref, dilations[1])):
        x = conv_stage(x, w_ref, b_ref, d) + x                   # residual

    out = x[:, halo:halo + tile_t] * m_b[:, halo:halo + tile_t]  # final mask
    o_ref[0] = out.astype(o_ref.dtype)


def _pick_tile_t(c_pad, t, max_lanes=2048, budget_bytes=16 << 20):
    """Largest 128-multiple time tile with a modest per-step VMEM footprint
    (safe for the 32 MiB scoped default and v7x's smaller physical VMEM)."""
    # rough f32 bytes / column: double-buffered x+out blocks (4C) + in-kernel
    # window / stacked / stage temporaries (~8C).
    per_col = 4 * (4 * c_pad + 8 * c_pad)
    tile = max(128, (budget_bytes // max(per_col, 1)) // 128 * 128)
    return int(min(tile, max_lanes, _round_up(t, 128)))


def resblock2_forward(x, params, x_mask=None, *, kernel_size=3, dilations=(1, 3),
                      tile_t=None):
    """ResBlock2 forward.  x: (B, C, T) float32, x_mask: None or (B, 1, T)."""
    B, C, T = x.shape
    K = int(kernel_size)
    assert K % 2 == 1, "odd kernel_size only"
    halo = HALO
    reach = sum(((K - 1) // 2) * int(d) for d in dilations)
    assert reach <= halo, "halo too small for kernel_size / dilations"

    # ---- parameter glue: fold weight norm, fuse the K taps, pad channels ----
    def effective_weight(v, g):
        norm = jnp.sqrt(jnp.sum(v * v, axis=(1, 2), keepdims=True))
        return g * v / norm

    C_p = max(8, _round_up(C, 8))                      # sublane-aligned channels
    ws, bs = [], []
    for i in range(2):
        w = effective_weight(params[f"v{i}"], params[f"g{i}"])       # (C, C, K)
        w = jnp.pad(w, ((0, C_p - C), (0, C_p - C), (0, 0)))
        ws.append(jnp.transpose(w, (0, 2, 1))                        # tap-major cols
                  .reshape(C_p, K * C_p).astype(jnp.float32))
        bs.append(jnp.pad(params[f"b{i}"], (0, C_p - C))
                  .reshape(C_p, 1).astype(jnp.float32))

    # ---- time tiling: pad T, always carry a mask (it also realises the conv's
    #      zero padding at the global sequence ends once T is tiled) ----
    if tile_t is None:
        tile_t = _pick_tile_t(C_p, T)
    assert tile_t % 128 == 0
    nt = pl.cdiv(T, tile_t)
    T_p = nt * tile_t

    xp = jnp.pad(x.astype(jnp.float32), ((0, 0), (0, C_p - C), (0, T_p - T)))
    m = jnp.ones((B, 1, T), jnp.float32) if x_mask is None else x_mask.astype(jnp.float32)
    mp = jnp.pad(m, ((0, 0), (0, 0), (0, T_p - T)))

    # halo slabs: for tile ti, columns [ti*tile-halo, ti*tile) ++ [(ti+1)*tile, +halo)
    def build_halos(a):
        ap = jnp.pad(a, ((0, 0), (0, 0), (halo, halo)))
        pieces = []
        for ti in range(nt):
            lo = ti * tile_t
            pieces.append(jnp.concatenate(
                [ap[:, :, lo:lo + halo],
                 ap[:, :, lo + tile_t + halo:lo + tile_t + 2 * halo]], axis=-1))
        return jnp.stack(pieces, axis=1)               # (B, nt, C, 2*halo)

    xh = build_halos(xp)
    mh = build_halos(mp)

    kernel = functools.partial(_resblock2_kernel,
                               dilations=tuple(int(d) for d in dilations),
                               kernel_size=K, halo=halo)

    out = pl.pallas_call(
        kernel,
        out_shape=jax.ShapeDtypeStruct((B, C_p, T_p), x.dtype),
        grid_spec=pltpu.PrefetchScalarGridSpec(
            num_scalar_prefetch=0,
            grid=(B, nt),
            in_specs=[
                pl.BlockSpec((1, C_p, tile_t), lambda b, t: (b, 0, t)),          # x tile
                pl.BlockSpec((1, 1, C_p, 2 * halo), lambda b, t: (b, t, 0, 0)),  # x halo
                pl.BlockSpec((1, 1, tile_t), lambda b, t: (b, 0, t)),            # mask tile
                pl.BlockSpec((1, 1, 1, 2 * halo), lambda b, t: (b, t, 0, 0)),    # mask halo
                pl.BlockSpec((C_p, K * C_p), lambda b, t: (0, 0)),               # w1 (resident)
                pl.BlockSpec((C_p, 1), lambda b, t: (0, 0)),                     # b1
                pl.BlockSpec((C_p, K * C_p), lambda b, t: (0, 0)),               # w2
                pl.BlockSpec((C_p, 1), lambda b, t: (0, 0)),                     # b2
            ],
            out_specs=pl.BlockSpec((1, C_p, tile_t), lambda b, t: (b, 0, t)),
        ),
        compiler_params=pltpu.CompilerParams(
            dimension_semantics=("parallel", "parallel")),
    )(xp, xh, mp, mh, ws[0], bs[0], ws[1], bs[1])

    return out[:, :C, :T]


# ---------------- pure-JAX reference for verification ----------------
def _conv1d_ref(x, w, b, dilation):
    pad = (w.shape[-1] * dilation - dilation) // 2
    y = lax.conv_general_dilated(
        x, w, window_strides=(1,), padding=[(pad, pad)],
        rhs_dilation=(dilation,),
        dimension_numbers=("NCH", "OIH", "NCH"),
        precision=lax.Precision.HIGHEST)
    return y + b[None, :, None]


def resblock2_ref(x, params, x_mask=None, *, dilations=(1, 3)):
    def effective_weight(v, g):
        norm = jnp.sqrt(jnp.sum(v * v, axis=(1, 2), keepdims=True))
        return g * v / norm

    for i, d in enumerate(dilations):
        xt = jnp.where(x >= 0, x, LRELU_SLOPE * x)
        if x_mask is not None:
            xt = xt * x_mask
        w = effective_weight(params[f"v{i}"], params[f"g{i}"])
        xt = _conv1d_ref(xt, w, params[f"b{i}"], d)
        x = xt + x
    if x_mask is not None:
        x = x * x_mask
    return x


if __name__ == "__main__":
    key = jax.random.PRNGKey(0)

    def make_params(k, C, K=3):
        kv0, kv1, kb0, kb1 = jax.random.split(k, 4)
        v0 = 0.01 * jax.random.normal(kv0, (C, C, K), jnp.float32)
        v1 = 0.01 * jax.random.normal(kv1, (C, C, K), jnp.float32)
        return {
            "v0": v0, "g0": jnp.sqrt(jnp.sum(v0 * v0, axis=(1, 2), keepdims=True)),
            "b0": 0.1 * jax.random.normal(kb0, (C,), jnp.float32),
            "v1": v1, "g1": jnp.sqrt(jnp.sum(v1 * v1, axis=(1, 2), keepdims=True)),
            "b1": 0.1 * jax.random.normal(kb1, (C,), jnp.float32),
        }

    def check(out, ref, name):
        out = jax.block_until_ready(out)
        assert out.shape == ref.shape, f"{name}: shape {out.shape} vs {ref.shape}"
        err = float(jnp.max(jnp.abs(out - ref)))
        assert err < 5e-4, f"{name}: max err {err}"

    kp, kx1, kx2, km2, kx3 = jax.random.split(key, 5)
    params = make_params(kp, 8)

    # 1) single time tile, no mask
    x1 = jax.random.normal(kx1, (2, 8, 256), jnp.float32)
    check(resblock2_forward(x1, params), resblock2_ref(x1, params), "no-mask")

    # 2) non-multiple-of-128 T with a mask (exercises time padding + mask path)
    x2 = jax.random.normal(kx2, (2, 8, 200), jnp.float32)
    m2 = (jax.random.uniform(km2, (2, 1, 200)) > 0.2).astype(jnp.float32)
    check(resblock2_forward(x2, params, m2), resblock2_ref(x2, params, m2), "mask")

    # 3) multiple time tiles (exercises the halo path), no mask
    x3 = jax.random.normal(kx3, (1, 8, 384), jnp.float32)
    check(resblock2_forward(x3, params, tile_t=128), resblock2_ref(x3, params), "tiled")

    print("KERNEL_OK")
</pallas_src>

<mosaic_0001>
module attributes {stable_mosaic.version = 11 : i64} {
  func.func @_resblock2_kernel(%arg0: i32, %arg1: i32, %arg2: memref<1x8x256xf32, #tpu.memory_space<vmem>>, %arg3: memref<1x1x8x256xf32, #tpu.memory_space<vmem>>, %arg4: memref<1x1x256xf32, #tpu.memory_space<vmem>>, %arg5: memref<1x1x1x256xf32, #tpu.memory_space<vmem>>, %arg6: memref<8x24xf32, #tpu.memory_space<vmem>>, %arg7: memref<8x1xf32, #tpu.memory_space<vmem>>, %arg8: memref<8x24xf32, #tpu.memory_space<vmem>>, %arg9: memref<8x1xf32, #tpu.memory_space<vmem>>, %arg10: memref<1x8x256xf32, #tpu.memory_space<vmem>>) attributes {dimension_semantics = [#tpu.dimension_semantics<parallel>, #tpu.dimension_semantics<parallel>], iteration_bounds = array<i64: 2, 1>, scalar_prefetch = 0 : i64, scratch_operands = 0 : i64, tpu.core_type = #tpu.core_type<tc>, window_params = [{transform_indices = @transform_0, window_bounds = array<i64: 1, 8, 256>}, {transform_indices = @transform_1, window_bounds = array<i64: 1, 1, 8, 256>}, {transform_indices = @transform_2, window_bounds = array<i64: 1, 1, 256>}, {transform_indices = @transform_3, window_bounds = array<i64: 1, 1, 1, 256>}, {pipeline_mode = #tpu.pipeline_mode<synchronous>, transform_indices = @transform_4, window_bounds = array<i64: 8, 24>}, {pipeline_mode = #tpu.pipeline_mode<synchronous>, transform_indices = @transform_5, window_bounds = array<i64: 8, 1>}, {pipeline_mode = #tpu.pipeline_mode<synchronous>, transform_indices = @transform_6, window_bounds = array<i64: 8, 24>}, {pipeline_mode = #tpu.pipeline_mode<synchronous>, transform_indices = @transform_7, window_bounds = array<i64: 8, 1>}, {transform_indices = @transform_8, window_bounds = array<i64: 1, 8, 256>}]} {
    %c0 = arith.constant 0 : index
    %c0_0 = arith.constant 0 : index
    %c0_1 = arith.constant 0 : index
    %c0_2 = arith.constant 0 : index
    %0 = vector.load %arg3[%c0, %c0_0, %c0_1, %c0_2] : memref<1x1x8x256xf32, #tpu.memory_space<vmem>>, vector<1x1x8x256xf32>
    %1 = vector.shape_cast %0 : vector<1x1x8x256xf32> to vector<8x256xf32>
    %2 = vector.extract_strided_slice %1 {offsets = [0, 0], sizes = [8, 128], strides = [1, 1]} : vector<8x256xf32> to vector<8x128xf32>
    %c0_3 = arith.constant 0 : index
    %c0_4 = arith.constant 0 : index
    %c0_5 = arith.constant 0 : index
    %3 = vector.load %arg2[%c0_3, %c0_4, %c0_5] : memref<1x8x256xf32, #tpu.memory_space<vmem>>, vector<1x8x256xf32>
    %4 = vector.shape_cast %3 : vector<1x8x256xf32> to vector<8x256xf32>
    %5 = vector.extract_strided_slice %1 {offsets = [0, 128], sizes = [8, 128], strides = [1, 1]} : vector<8x256xf32> to vector<8x128xf32>
    %6 = tpu.concatenate %2, %4, %5 in 1 : vector<8x128xf32>, vector<8x256xf32>, vector<8x128xf32> -> vector<8x512xf32>
    %c0_6 = arith.constant 0 : index
    %c0_7 = arith.constant 0 : index
    %c0_8 = arith.constant 0 : index
    %c0_9 = arith.constant 0 : index
    %7 = vector.load %arg5[%c0_6, %c0_7, %c0_8, %c0_9] : memref<1x1x1x256xf32, #tpu.memory_space<vmem>>, vector<1x1x1x256xf32>
    %8 = vector.shape_cast %7 : vector<1x1x1x256xf32> to vector<1x256xf32>
    %9 = vector.extract_strided_slice %8 {offsets = [0, 0], sizes = [1, 128], strides = [1, 1]} : vector<1x256xf32> to vector<1x128xf32>
    %c0_10 = arith.constant 0 : index
    %c0_11 = arith.constant 0 : index
    %c0_12 = arith.constant 0 : index
    %10 = vector.load %arg4[%c0_10, %c0_11, %c0_12] : memref<1x1x256xf32, #tpu.memory_space<vmem>>, vector<1x1x256xf32>
    %11 = vector.shape_cast %10 : vector<1x1x256xf32> to vector<1x256xf32>
    %12 = vector.extract_strided_slice %8 {offsets = [0, 128], sizes = [1, 128], strides = [1, 1]} : vector<1x256xf32> to vector<1x128xf32>
    %13 = tpu.concatenate %9, %11, %12 in 1 : vector<1x128xf32>, vector<1x256xf32>, vector<1x128xf32> -> vector<1x512xf32>
    %14 = vector.shape_cast %13 : vector<1x512xf32> to vector<1x512xf32>
    %15 = vector.broadcast %14 : vector<1x512xf32> to vector<8x512xf32>
    %cst = arith.constant 0.000000e+00 : f32
    %16 = vector.broadcast %cst : f32 to vector<8x512xf32>
    %17 = arith.cmpf oge, %6, %16 : vector<8x512xf32>
    %cst_13 = arith.constant 1.000000e-01 : f32
    %18 = vector.broadcast %cst_13 : f32 to vector<8x512xf32>
    %19 = arith.mulf %18, %6 : vector<8x512xf32>
    %20 = arith.select %17, %6, %19 : vector<8x512xi1>, vector<8x512xf32>
    %21 = arith.mulf %20, %15 : vector<8x512xf32>
    %22 = vector.extract_strided_slice %21 {offsets = [0, 511], sizes = [8, 1], strides = [1, 1]} : vector<8x512xf32> to vector<8x1xf32>
    %23 = vector.extract_strided_slice %21 {offsets = [0, 0], sizes = [8, 511], strides = [1, 1]} : vector<8x512xf32> to vector<8x511xf32>
    %24 = tpu.concatenate %22, %23 in 1 : vector<8x1xf32>, vector<8x511xf32> -> vector<8x512xf32>
    %25 = vector.extract_strided_slice %21 {offsets = [0, 1], sizes = [8, 511], strides = [1, 1]} : vector<8x512xf32> to vector<8x511xf32>
    %26 = vector.extract_strided_slice %21 {offsets = [0, 0], sizes = [8, 1], strides = [1, 1]} : vector<8x512xf32> to vector<8x1xf32>
    %27 = tpu.concatenate %25, %26 in 1 : vector<8x511xf32>, vector<8x1xf32> -> vector<8x512xf32>
    %28 = tpu.concatenate %24, %21, %27 in 0 : vector<8x512xf32>, vector<8x512xf32>, vector<8x512xf32> -> vector<24x512xf32>
    %c0_14 = arith.constant 0 : index
    %c0_15 = arith.constant 0 : index
    %29 = vector.load %arg6[%c0_14, %c0_15] : memref<8x24xf32, #tpu.memory_space<vmem>>, vector<8x24xf32>
    %cst_16 = arith.constant dense<0.000000e+00> : vector<8x512xf32>
    %30 = tpu.matmul %29, %28, %cst_16 {dimension_numbers = #tpu.dot_dimension_numbers<[1], [0], [0], [1], [0, 0, 1, 1], [], []>, precision = #tpu.contract_precision<fp32>} : vector<8x24xf32>, vector<24x512xf32>, vector<8x512xf32> -> vector<8x512xf32>
    %c0_17 = arith.constant 0 : index
    %c0_18 = arith.constant 0 : index
    %31 = vector.load %arg7[%c0_17, %c0_18] : memref<8x1xf32, #tpu.memory_space<vmem>>, vector<8x1xf32>
    %32 = vector.broadcast %31 : vector<8x1xf32> to vector<8x512xf32>
    %33 = arith.addf %30, %32 : vector<8x512xf32>
    %34 = arith.addf %33, %6 : vector<8x512xf32>
    %cst_19 = arith.constant 0.000000e+00 : f32
    %35 = vector.broadcast %cst_19 : f32 to vector<8x512xf32>
    %36 = arith.cmpf oge, %34, %35 : vector<8x512xf32>
    %cst_20 = arith.constant 1.000000e-01 : f32
    %37 = vector.broadcast %cst_20 : f32 to vector<8x512xf32>
    %38 = arith.mulf %37, %34 : vector<8x512xf32>
    %39 = arith.select %36, %34, %38 : vector<8x512xi1>, vector<8x512xf32>
    %40 = arith.mulf %39, %15 : vector<8x512xf32>
    %41 = vector.extract_strided_slice %40 {offsets = [0, 509], sizes = [8, 3], strides = [1, 1]} : vector<8x512xf32> to vector<8x3xf32>
    %42 = vector.extract_strided_slice %40 {offsets = [0, 0], sizes = [8, 509], strides = [1, 1]} : vector<8x512xf32> to vector<8x509xf32>
    %43 = tpu.concatenate %41, %42 in 1 : vector<8x3xf32>, vector<8x509xf32> -> vector<8x512xf32>
    %44 = vector.extract_strided_slice %40 {offsets = [0, 3], sizes = [8, 509], strides = [1, 1]} : vector<8x512xf32> to vector<8x509xf32>
    %45 = vector.extract_strided_slice %40 {offsets = [0, 0], sizes = [8, 3], strides = [1, 1]} : vector<8x512xf32> to vector<8x3xf32>
    %46 = tpu.concatenate %44, %45 in 1 : vector<8x509xf32>, vector<8x3xf32> -> vector<8x512xf32>
    %47 = tpu.concatenate %43, %40, %46 in 0 : vector<8x512xf32>, vector<8x512xf32>, vector<8x512xf32> -> vector<24x512xf32>
    %c0_21 = arith.constant 0 : index
    %c0_22 = arith.constant 0 : index
    %48 = vector.load %arg8[%c0_21, %c0_22] : memref<8x24xf32, #tpu.memory_space<vmem>>, vector<8x24xf32>
    %cst_23 = arith.constant dense<0.000000e+00> : vector<8x512xf32>
    %49 = tpu.matmul %48, %47, %cst_23 {dimension_numbers = #tpu.dot_dimension_numbers<[1], [0], [0], [1], [0, 0, 1, 1], [], []>, precision = #tpu.contract_precision<fp32>} : vector<8x24xf32>, vector<24x512xf32>, vector<8x512xf32> -> vector<8x512xf32>
    %c0_24 = arith.constant 0 : index
    %c0_25 = arith.constant 0 : index
    %50 = vector.load %arg9[%c0_24, %c0_25] : memref<8x1xf32, #tpu.memory_space<vmem>>, vector<8x1xf32>
    %51 = vector.broadcast %50 : vector<8x1xf32> to vector<8x512xf32>
    %52 = arith.addf %49, %51 : vector<8x512xf32>
    %53 = arith.addf %52, %34 : vector<8x512xf32>
    %54 = vector.extract_strided_slice %53 {offsets = [0, 128], sizes = [8, 256], strides = [1, 1]} : vector<8x512xf32> to vector<8x256xf32>
    %55 = vector.extract_strided_slice %15 {offsets = [0, 128], sizes = [8, 256], strides = [1, 1]} : vector<8x512xf32> to vector<8x256xf32>
    %56 = arith.mulf %54, %55 : vector<8x256xf32>
    %c0_26 = arith.constant 0 : index
    %c0_27 = arith.constant 0 : index
    %c0_28 = arith.constant 0 : index
    %57 = vector.load %arg10[%c0_26, %c0_27, %c0_28] : memref<1x8x256xf32, #tpu.memory_space<vmem>>, vector<1x8x256xf32>
    %58 = vector.shape_cast %57 : vector<1x8x256xf32> to vector<8x256xf32>
    %59 = vector.shape_cast %56 : vector<8x256xf32> to vector<1x8x256xf32>
    tpu.vector_store %arg10[%c0_26, %c0_27, %c0_28], %59 {strides = array<i32>} : memref<1x8x256xf32, #tpu.memory_space<vmem>>, vector<1x8x256xf32>,
    return
  }
  func.func @transform_0(%arg0: i32, %arg1: i32) -> (i32, i32, i32) {
    %c0_i32 = arith.constant 0 : i32
    %c0_i32_0 = arith.constant 0 : i32
    return %arg0, %c0_i32, %arg1 : i32, i32, i32
  }
  func.func @transform_1(%arg0: i32, %arg1: i32) -> (i32, i32, i32, i32) {
    %c0_i32 = arith.constant 0 : i32
    %c0_i32_0 = arith.constant 0 : i32
    %c0_i32_1 = arith.constant 0 : i32
    return %arg0, %arg1, %c0_i32, %c0_i32_0 : i32, i32, i32, i32
  }
  func.func @transform_2(%arg0: i32, %arg1: i32) -> (i32, i32, i32) {
    %c0_i32 = arith.constant 0 : i32
    %c0_i32_0 = arith.constant 0 : i32
    return %arg0, %c0_i32, %arg1 : i32, i32, i32
  }
  func.func @transform_3(%arg0: i32, %arg1: i32) -> (i32, i32, i32, i32) {
    %c0_i32 = arith.constant 0 : i32
    %c0_i32_0 = arith.constant 0 : i32
    %c0_i32_1 = arith.constant 0 : i32
    return %arg0, %arg1, %c0_i32, %c0_i32_0 : i32, i32, i32, i32
  }
  func.func @transform_4(%arg0: i32, %arg1: i32) -> (i32, i32) {
    %c0_i32 = arith.constant 0 : i32
    %c0_i32_0 = arith.constant 0 : i32
    %c0_i32_1 = arith.constant 0 : i32
    return %c0_i32, %c0_i32_0 : i32, i32
  }
  func.func @transform_5(%arg0: i32, %arg1: i32) -> (i32, i32) {
    %c0_i32 = arith.constant 0 : i32
    %c0_i32_0 = arith.constant 0 : i32
    %c0_i32_1 = arith.constant 0 : i32
    return %c0_i32, %c0_i32_0 : i32, i32
  }
  func.func @transform_6(%arg0: i32, %arg1: i32) -> (i32, i32) {
    %c0_i32 = arith.constant 0 : i32
    %c0_i32_0 = arith.constant 0 : i32
    %c0_i32_1 = arith.constant 0 : i32
    return %c0_i32, %c0_i32_0 : i32, i32
  }
  func.func @transform_7(%arg0: i32, %arg1: i32) -> (i32, i32) {
    %c0_i32 = arith.constant 0 : i32
    %c0_i32_0 = arith.constant 0 : i32
    %c0_i32_1 = arith.constant 0 : i32
    return %c0_i32, %c0_i32_0 : i32, i32
  }
  func.func @transform_8(%arg0: i32, %arg1: i32) -> (i32, i32, i32) {
    %c0_i32 = arith.constant 0 : i32
    %c0_i32_0 = arith.constant 0 : i32
    return %arg0, %c0_i32, %arg1 : i32, i32, i32
  }
}

</mosaic_0001>

<bundles_post_ra>
// kernel: tpu_custom_call.1
= control target key start
LH: loop header
LB: loop body
LE: loop exit
PB: predicated region body
PF: predicated region fallthrough
CT: control target
= control target key end

     0   :  { %s3911_s0 = inlined_call_operand.hbm [shape: f32[2,8,256], index: 0, kind: input, shape index: {}]   ;;  %s3912_s1 = inlined_call_operand.hbm [shape: f32[2,1,8,256], index: 1, kind: input, shape index: {}]   ;;  %s3913_s2 = inlined_call_operand.vmem [shape: f32[2,1,256], index: 2, kind: input, shape index: {}]   ;;  %s3914_s3 = inlined_call_operand.vmem [shape: f32[2,1,1,256], index: 3, kind: input, shape index: {}]   ;;  %s3915_s4 = inlined_call_operand.vmem [shape: f32[8,24], index: 4, kind: input, shape index: {}]   ;;  %s3916_s5 = inlined_call_operand.vmem [shape: f32[8,1], index: 5, kind: input, shape index: {}]   ;;  %s3917_s6 = inlined_call_operand.vmem [shape: f32[8,24], index: 6, kind: input, shape index: {}]   ;;  %s3918_s7 = inlined_call_operand.vmem [shape: f32[8,1], index: 7, kind: input, shape index: {}]   ;;  %s3919_s8 = inlined_call_operand.hbm [shape: f32[2,8,256], index: 8, kind: output, shape index: {}]  }
   0x1   :  { %3926 = sst [smem:[#allocation13_spill]] %s3911_s0 }
   0x2   :  { %13 = vsyncpa [#allocation3], 0 }
   0x3   :  { %15 = vsyncpa [#allocation3 + $0x1], 0 }
   0x4   :  { %16 = vsyncpa [#allocation6], 0 }
   0x5   :  { %18 = vsyncpa [#allocation6 + $0x1], 0 }
   0x6   :  { %19 = vsyncpa [#allocation4], 0 }
   0x7   :  { %21 = vsyncpa [#allocation4 + $0x1], 0  ;;  %s3266_s27 = smov 0   ;;  %s3268_s28 = smov 0  }
   0x8   :  { %s3270_s29 = smov 0   ;;  %s3272_s30 = smov 0  }
   0x9   :  { %s3274_s9 = smov 0   ;;  %s3276_s10 = smov 0  }
   0xa LB: > { %3927 = sst [smem:[#allocation11_spill]] %s3206_s9  ;;  %s2846_s11 = sadd.s32 4294967295, %s3210_s10   ;;  %s3210_s10 = sphi %s3276_s10, %s27_s10   ;;  %s3206_s9 = sphi %s3274_s9, %s3946_s9   ;;  %s3202_s30 = sphi %s3272_s30, %s3945_s30   ;;  %s3198_s29 = sphi %s3270_s29, %s3949_s29   ;;  %s3194_s28 = sphi %s3268_s28, %s3948_s28   ;;  %s3190_s27 = sphi %s3266_s27, %s3947_s27  }
   0xb   : > { %s2847_s12 = sadd.s32 4294967294, %s3210_s10   ;;  %s39_s13 = sadd.s32 1, %s3206_s9 }
   0xc   : > { %s48_s14 = sadd.s32 1, %s3198_s29  ;;  %p41_p0 = scmp.ge.s32.totalorder %s39_s13, 2 }
   0xd   : > { %p55_p1 = scmp.ne.s32.totalorder %s3198_s29, %s3194_s28  ;;  %p56_p2 = scmp.eq.s32.totalorder %s3210_s10, 0 }
   0xe   : > { %p61_p3 = scmp.ne.s32.totalorder %s3194_s28, %s3190_s27  ;;  %s3951_s13 = smov (%p41_p0, %s39_s13), 0 }
   0xf   : > { %3928 = sst [smem:[#allocation12_spill]] %s3951_s13  ;;  %p3307_p4 = por %p56_p2, %p55_p1 }
  0x10   : > { %p62_p5 = scmp.eq.s32.totalorder %s2846_s11, 0  ;;  %s43_s16 = ssub.s32 %s3206_s9, %s3951_s13 }
  0x11   : > { %p255_p6 = scmp.eq.s32.totalorder %s2846_s11, 1  ;;  %p46_p7 = scmp.eq.s32.totalorder %s43_s16, 0 }
  0x12   : > { %p3313_p8 = por %p62_p5, %p61_p3  ;;  %p261_p10 = scmp.eq.s32.totalorder %s2847_s12, 1 }
  0x13   : > { %p3317_p9 = por %p255_p6, %p55_p1  ;;  %p3007_p13 = scmp.lt.s32.totalorder %s3210_s10, 2 }
  0x14   : > { %s3930_s17 = scalar_select %p3313_p8, 1, 0 }
  0x15   : > { %s3931_s18 = scalar_select %p3317_p9, 1, 0 }
  0x16   : > { %s3322_s19 = scalar_select %p46_p7, %s3198_s29, %s48_s14  }
  0x17   : > { %p3324_p11 = por %p261_p10, %p61_p3  ;;  %s3331_s21 = sand.u32 1, %s3198_s29  }
  0x18   : > { %s3920_s22 = sshll.u32 %s3331_s21, 4  ;;  %s3921_s23 = sshll.u32 %s3206_s9, 8 }
  0x19   : > { %s3932_s20 = scalar_select %p3324_p11, 1, 0 }
  0x1a   : > { %s3933_s0 = sld [smem:[#allocation13_spill]]  ;;  %s297_s11 = scalar_lea.vmem [#allocation2], %s3920_s22 }
  0x1b   : > { %s307_s12 = sshll.u32 %s297_s11, 4  ;;  %p3348_p0 = pnand %p3007_p13, %p3307_p4  ;;  %s3344_s12 = int_to_ptr.vmem [resolvable:$true] %s307_s12 }
  0x1c   : > { %s294_s16 = scalar_lea.sflag [#allocation3], %s3331_s21 }
  0x1d   : > { %p3066_p5 = pneg %p3348_p0 }
  0x20   : > { %s3340_s26 = scalar_lea.hbm %s3933_s0, %s3921_s23  ;;  %s3069_s15 = scalar_lea.hbm %s3933_s0, 512 }
  0x21   : > { %s3064_s24 = scalar_lea.hbm %s3340_s26, 256  ;;  %p3070_p4 = scmp.lt.u32.totalorder %s3340_s26, %s3933_s0 }
  0x22   : > { %p3065_p3 = scmp.ne.s32.totalorder %s3340_s26, %s3064_s24  ;;  %p3071_p10 = scmp.lt.u32.totalorder %s3069_s15, %s3064_s24 }
  0x23   : > { %p3073_p12 = scmp.lt.u32.totalorder %s3064_s24, %s3340_s26 }
  0x24   : > { %p3067_p6 = pnand %p3066_p5, %p3065_p3  ;;  %p3072_p13 = por %p3071_p10, %p3070_p4 }
  0x26   : > { %p3068_p7 = pneg %p3067_p6  ;;  %p3074_p1 = por %p3073_p12, %p3072_p13 }
  0x28   : > { %p3075_p2 = pnand %p3074_p1, %p3068_p7 }
  0x2a   : > { %3078 = shalt.err (!%p3075_p2)
}
  0x2b   : > { %s3079_s13 = scalar_lea.vmem %s3344_s12, 256  ;;  %s3212_s25 = smov [#allocation2]  }
  0x2c   : > { %p3080_p3 = scmp.ne.s32.totalorder %s3344_s12, %s3079_s13  ;;  %s3084_s11 = sshll.u32 %s3212_s25, 4  ;;  %s3085_s11 = int_to_ptr.vmem [resolvable:$false] %s3084_s11 }
  0x2d   : > { %s3086_s22 = scalar_lea.vmem %s3085_s11, 512  ;;  %p3087_p9 = scmp.lt.s32.totalorder %s3344_s12, %s3085_s11 }
  0x2e   : > { %p3082_p6 = pnand %p3080_p3, %p3066_p5  ;;  %p3088_p4 = scmp.lt.s32.totalorder %s3086_s22, %s3079_s13 }
  0x30   : > { %p3083_p11 = pneg %p3082_p6  ;;  %p3089_p10 = por %p3088_p4, %p3087_p9 }
  0x32   : > { %p3090_p12 = pnand %p3089_p10, %p3083_p11 }
  0x34   : > { %3093 = shalt.err (!%p3090_p12)
}
  0x35   : > { %2999 = dma.hbm_to_vmem [thread:$0]  (!%p3348_p0), %s3340_s26, 256, %s3344_s12, %s294_s16  }
  0x36   : > { %p3935_p1 = scmp.lt.s32.totalorder %s3210_s10, 3  ;;  %p3936_p2 = scmp.ge.s32.totalorder %s3210_s10, 1 }
  0x37   : > { %s3938_s13 = sshll.u32 %s3206_s9, 8  ;;  %s3939_s11 = sshll.u32 %s3331_s21, 4 }
  0x38   : > { %p3384_p7 = pnand %p3936_p2, %p3935_p1  ;;  %s3393_s25 = scalar_lea.hbm %s3912_s1, %s3938_s13 }
  0x39   : > { %s318_s22 = scalar_lea.vmem [#allocation5], %s3939_s11  ;;  %s315_s26 = scalar_lea.sflag [#allocation6], %s3331_s21 }
  0x3a   : > { %s3937_s23 = scalar_select %p3384_p7, 1, 0 }
  0x3b   : > { %s328_s0 = sshll.u32 %s318_s22, 4  ;;  %s3094_s12 = scalar_lea.hbm %s3393_s25, 256  ;;  %s329_s0 = int_to_ptr.vmem [resolvable:$true] %s328_s0 }
  0x3c   : > { %p3095_p9 = scmp.ne.s32.totalorder %s3393_s25, %s3094_s12  ;;  %s3099_s13 = scalar_lea.hbm %s3912_s1, 512 }
  0x3d   : > { %p3100_p3 = scmp.lt.u32.totalorder %s3393_s25, %s3912_s1  ;;  %p3101_p6 = scmp.lt.u32.totalorder %s3099_s13, %s3094_s12 }
  0x3e   : > { %p3097_p11 = pnand %p3095_p9, %p3066_p5  ;;  %p3103_p10 = scmp.lt.u32.totalorder %s3094_s12, %s3393_s25 }
  0x3f   : > { %p3102_p4 = por %p3101_p6, %p3100_p3 }
  0x40   : > { %p3098_p13 = pneg %p3097_p11 }
  0x41   : > { %p3104_p12 = por %p3103_p10, %p3102_p4 }
  0x43   : > { %p3105_p1 = pnand %p3104_p12, %p3098_p13 }
  0x45   : > { %3108 = shalt.err (!%p3105_p1)
}
  0x46   : > { %s3109_s21 = scalar_lea.vmem %s329_s0, 256  ;;  %s3213_s11 = smov [#allocation5]  }
  0x47   : > { %p3110_p2 = scmp.ne.s32.totalorder %s329_s0, %s3109_s21  ;;  %s3114_s9 = sshll.u32 %s3213_s11, 4  ;;  %s3115_s9 = int_to_ptr.vmem [resolvable:$false] %s3114_s9 }
  0x48   : > { %s3116_s22 = scalar_lea.vmem %s3115_s9, 512  ;;  %p3117_p8 = scmp.lt.s32.totalorder %s329_s0, %s3115_s9 }
  0x49   : > { %p3112_p9 = pnand %p3110_p2, %p3066_p5  ;;  %p3118_p7 = scmp.lt.s32.totalorder %s3116_s22, %s3109_s21 }
  0x4b   : > { %p3113_p11 = pneg %p3112_p9  ;;  %p3119_p3 = por %p3118_p7, %p3117_p8 }
  0x4d   : > { %p3120_p6 = pnand %p3119_p3, %p3113_p11 }
  0x4f   : > { %3123 = shalt.err (!%p3120_p6)
}
  0x50   : > { %3002 = dma.hbm_to_vmem [thread:$0]  (!%p3348_p0), %s3393_s25, 256, %s329_s0, %s315_s26  }
  0x51   : > { %p3940_p13 = scmp.ne.s32.totalorder %s3937_s23, 0 }
  0x52   : > { %s3420_s12 = sand.u32 (!%p3940_p13), 1, %s3194_s28   ;;  %p3941_p8 = scmp.ne.s32.totalorder (!%p3940_p13), %s3930_s17, 0 }
  0x53   : > { %360 = sbr.rel (%p3940_p13) target bundleno = 897 (0x381), region = 52  ;;  %s3423_s16 = sshll.u32 (!%p3940_p13), %s3420_s12, 4 }
  0x54   : > { %s363_s13 = scalar_lea.sflag (!%p3940_p13), [#allocation3], %s3420_s12  ;;  %s366_s24 = scalar_lea.vmem (!%p3940_p13), [#allocation2], %s3423_s16 }
  0x5a   : > { %3177 = dma.done.wait (%p3941_p8), %s363_s13, 256  }
  0x5b   : > { %3179 = vsyncadd (%p3941_p8), %s363_s13, 4294967040  ;;  %s372_s0 = scalar_lea.sflag [#allocation6], %s3420_s12  ;;  %s375_s14 = scalar_lea.vmem [#allocation5], %s3423_s16 }
  0x5c   : > { %3181 = dma.done.wait (%p3941_p8), %s372_s0, 256  }
  0x5d   : > { %3183 = vsyncadd (%p3941_p8), %s372_s0, 4294967040  ;;  %p431_p0 = scmp.lt.s32.totalorder %s3202_s30, 1  ;;  %v455_v0 = vlaneseq  ;;  %v3445_v4 = vld [vmem:[%s375_s14] sm:$0xff]  ;;  %v3451_v9 = vld [vmem:[%s375_s14 + $0x8] sm:$0xff]  ;;  %s3214_s17 = smov 1   ;;  %v3215_v29 = vmov 0.0  }
  0x5e   : > { %vm487_vm0 = vcmp.ge.f32.partialorder %v3445_v4, 0.0  ;;  %v491_v8 = vmul.f32 0.1, %v3445_v4  ;;  %v3453_v11 = vld [vmem:[%s366_s24] sm:$0xff]  ;;  %v3455_v12 = vld [vmem:[%s366_s24 + $0x8] sm:$0xff]  ;;  %vm490_vm1 = vcmp.ge.f32.partialorder %v3451_v9, 0.0  ;;  %624 = vmatprep.mubr.f32.mxu0 %v3215_v29  ;;  %1141 = vmatprep.mubr.f32.mxu1 %v3215_v29 }
  0x5f   : > { %s432_s23 = scalar_select %p431_p0, %s3202_s30, 1  ;;  %v456_v1 = vshrl.u32 %v455_v0, 7  ;;  %v494_v13 = vmul.f32 0.1, %v3451_v9  ;;  %vm488_vm2 = vcmp.ge.f32.partialorder %v3453_v11, 0.0  ;;  %vm489_vm3 = vcmp.ge.f32.partialorder %v3455_v12, 0.0 }
  0x60   : > { %v495_v15 = vsel %vm487_vm0, %v3445_v4, %v491_v8  ;;  %v492_v17 = vmul.f32 0.1, %v3453_v11  ;;  %v493_v25 = vmul.f32 0.1, %v3455_v12  ;;  %s3216_s13 = smov 127   ;;  %v544_v30 = vld [vmem:[%s3916_s5] sm:$0xff] }
  0x61   : > { %s2860_s25 = sshll.u32 %s432_s23, 1  ;;  %v457_v2 = vsub.s32 0, %v456_v1  ;;  %v461_v3 = vsub.s32 1, %v456_v1  ;;  %v498_v20 = vsel %vm490_vm1, %v3451_v9, %v494_v13  ;;  %v3217_v31 = vmov 0   ;;  %v543_v32 = vld [vmem:[%s3915_s4] sm:$0xff]  ;;  %s3219_s26 = smov 125  }
  0x62   : > { %s437_s21 = scalar_lea.vmem %s3913_s2, %s2860_s25  ;;  %s446_s22 = scalar_lea.vmem %s3914_s3, %s2860_s25  ;;  %v496_v23 = vsel %vm488_vm2, %v3453_v11, %v492_v17  ;;  %v497_v27 = vsel %vm489_vm3, %v3455_v12, %v493_v25  ;;  %3063 = vset.pattern.permute.xlu0 %v3217_v31  ;;  %vm550_vm4 = vcmask 195584   ;;  %vm516_vm5 = vcmask 7168  }
  0x63   : > { %v452_v5 = vld [vmem:[%s446_s22] sm:$0x3]  ;;  %v552_v33 = vsel %vm550_vm4, %v543_v32, 0  ;;  %vm533_vm6 = vcmask 1039360   ;;  %s3218_s25 = smov 3   ;;  %vm1621_vm11 = vcmask 23552  }
  0x64   : > { %v453_v6 = vld [vmem:[%s437_s21] sm:$0x3]  ;;  %v3447_v7 = vrot.slane %v452_v5, %v457_v2  ;;  %v469_v10 = vrot.slane %v452_v5, %v461_v3  ;;  %v3499_v35 = vand.u32 4294901760, %v552_v33  ;;  %vm1638_vm12 = vcmask 1022976   ;;  %s428_s22 = scalar_lea.vmem [#allocation7], %s3423_s16  ;;  %s2687_s14 = scalar_lea.sflag [#allocation4], %s3420_s12 }
  0x65   : > { %v458_v14 = vrot.slane %v453_v6, %v457_v2  ;;  %v462_v18 = vrot.slane %v453_v6, %v461_v3  ;;  %p3942_p7 = scmp.ne.s32.totalorder %s3931_s18, 0 }
  0x66   : > { %v3461_v16 = vrot.slane %v469_v10, %v457_v2  ;;  %v3465_v19 = vmul.f32 %v495_v15, %v3447_v7  ;;  %v3507_v40 = vsub.f32 %v552_v33, %v3499_v35 }
  0x67   : > { %v3468_v21 = vrot.slane %v458_v14, %v457_v2  ;;  %v3475_v24 = vrot.slane %v462_v18, %v457_v2 }
  0x68   : > { %v3472_v22 = vmul.f32 %v498_v20, %v3461_v16  ;;  %510 = vrot.lane.b32.xlu0 %v3465_v19, %s3214_s17  ;;  %v560_v34 = vand.u32 4294901760, %v3465_v19  ;;  %v3518_v46 = vand.u32 4294901760, %v3507_v40 }
  0x69   : > { %v500_v26 = vmul.f32 %v496_v23, %v3468_v21  ;;  %v3483_v28 = vmul.f32 %v497_v27, %v3475_v24 }
  0x6a   : > { %504 = vrot.lane.b32.xlu1 %v3472_v22, %s3214_s17  ;;  %v1075_v36 = vand.u32 4294901760, %v3472_v22  ;;  %v3504_v39 = vsub.f32 %v3465_v19, %v560_v34  ;;  %v628_v57 = vsub.f32 %v3507_v40, %v3518_v46 }
  0x6b   : > { %v558_v37 = vand.u32 4294901760, %v500_v26  ;;  %v1077_v38 = vand.u32 4294901760, %v3483_v28 }
  0x6c   : > { %512 = vrot.lane.b32.xlu0 %v500_v26, %s3214_s17  ;;  %v3510_v41 = vsub.f32 %v3472_v22, %v1075_v36  ;;  %v656_v47 = vand.u32 4294901760, %v3504_v39 }
  0x6d   : > { %v3512_v42 = vsub.f32 %v500_v26, %v558_v37  ;;  %v3515_v44 = vsub.f32 %v3483_v28, %v1077_v38 }
  0x6e   : > { %514 = vrot.lane.b32.xlu1 %v3483_v28, %s3214_s17  ;;  %v1167_v49 = vand.u32 4294901760, %v3510_v41  ;;  %v657_v58 = vsub.f32 %v3504_v39, %v656_v47  ;;  %s2869_s17 = sshll.u32 %s3202_s30, 8  ;;  %s3220_s30 = smov [#allocation7]  }
  0x6f   : > { %v650_v51 = vand.u32 4294901760, %v3512_v42  ;;  %v1173_v53 = vand.u32 4294901760, %v3515_v44  ;;  %s3862_s0 = scalar_lea.hbm %s3919_s8, %s2869_s17 }
  0x70   : > { %527 = vrot.lane.b32.xlu0 %v500_v26, %s3216_s13  ;;  %v3538_v62 = vsub.f32 %v3510_v41, %v1167_v49  ;;  %v658_v23 = vand.u32 4294901760, %v657_v58 }
  0x71   : > { %v651_v2 = vsub.f32 %v3512_v42, %v650_v51  ;;  %v1174_v10 = vsub.f32 %v3515_v44, %v1173_v53 }
  0x72   : > { %529 = vrot.lane.b32.xlu1 %v3483_v28, %s3216_s13  ;;  %v629_v28 = vand.u32 4294901760, %v628_v57  ;;  %v1169_v33 = vand.u32 4294901760, %v3538_v62 }
  0x73   : > { %v652_v32 = vand.u32 4294901760, %v651_v2 }
  0x74   : > { %525 = vrot.lane.b32.xlu0 %v3465_v19, %s3216_s13 }
  0x76   : > { %531 = vrot.lane.b32.xlu1 %v3472_v22, %s3216_s13  ;;  %s2703_s13 = sshll.u32 %s428_s22, 4  ;;  %s3864_s13 = int_to_ptr.vmem [resolvable:$true] %s2703_s13 }
  0x77   : > { %s3124_s23 = scalar_lea.vmem %s3864_s13, 256 }
  0x78   : > { %547 = vperm.xlu0 %3063, %v544_v30   ;;  %p3125_p5 = scmp.ne.s32.totalorder %s3864_s13, %s3124_s23 }
  0x7a   : > { %p3126_p4 = pnand %p3125_p5, %p3942_p7 }
  0x7c   : > { %p3127_p10 = pneg %p3126_p4 }
  0xda   : > { %v511_v43 = vpop.permute.xlu0 %510 }
  0xdc   : > { %v505_v45 = vpop.permute.xlu1 %504 }
  0xdd   : > { %v524_v48 = vsel %vm516_vm5, %v505_v45, %v511_v43 }
  0xde   : > { %v556_v50 = vand.u32 4294901760, %v524_v48  ;;  %v513_v52 = vpop.permute.xlu0 %512 }
  0xdf   : > { %v517_v55 = vsel %vm516_vm5, %v511_v43, %v513_v52 }
  0xe0   : > { %v3525_v54 = vsub.f32 %v524_v48, %v556_v50  ;;  %v515_v56 = vpop.permute.xlu1 %514  ;;  %v554_v59 = vand.u32 4294901760, %v517_v55  ;;  %v3548_v8 = vpack.c.bf16 %v560_v34, %v556_v50  ;;  %v1175_v34 = vand.u32 4294901760, %v1174_v10 }
  0xe1   : > { %v518_v60 = vsel %vm516_vm5, %v513_v52, %v515_v56  ;;  %v519_v61 = vsel %vm516_vm5, %v515_v56, %v505_v45 }
  0xe2   : > { %v644_v63 = vand.u32 4294901760, %v3525_v54  ;;  %v1071_v0 = vand.u32 4294901760, %v519_v61  ;;  %v1073_v1 = vand.u32 4294901760, %v518_v60  ;;  %v3544_v3 = vsub.f32 %v517_v55, %v554_v59  ;;  %v528_v5 = vpop.permute.xlu0 %527 }
  0xe3   : > { %v3546_v6 = vpack.c.bf16 %v558_v37, %v554_v59 }
  0xe4   : > { %v645_v13 = vsub.f32 %v3525_v54, %v644_v63  ;;  %v3556_v14 = vsub.f32 %v519_v61, %v1071_v0  ;;  %v3558_v15 = vsub.f32 %v518_v60, %v1073_v1  ;;  %v530_v17 = vpop.permute.xlu1 %529  ;;  %v3560_v18 = vpack.c.bf16 %v1075_v36, %v1071_v0 }
  0xe5   : > { %v638_v19 = vand.u32 4294901760, %v3544_v3  ;;  %v535_v20 = vsel %vm533_vm6, %v528_v5, %v530_v17  ;;  %2871 = vmatprep.subr.bf16.mxu0 %v3546_v6  ;;  %v3565_v22 = vpack.c.bf16 %v1077_v38, %v1073_v1 }
  0xe6   : > { %v1155_v25 = vand.u32 4294901760, %v3556_v14  ;;  %v1161_v26 = vand.u32 4294901760, %v3558_v15  ;;  %v3569_v27 = vand.u32 4294901760, %v535_v20  ;;  %2873 = vmatpush1.bf16.msra.mxu0 %v3548_v8  ;;  %2895 = vmatprep.subr.bf16.mxu1 %v3560_v18  ;;  %v526_v30 = vpop.permute.xlu0 %525  ;;  %v646_v36 = vand.u32 4294901760, %v645_v13 }
  0xe7   : > { %2897 = vmatpush1.bf16.msra.mxu1 %v3565_v22  ;;  %v639_v31 = vsub.f32 %v3544_v3, %v638_v19  ;;  %v534_v43 = vsel %vm533_vm6, %v526_v30, %v528_v5 }
  0xe8   : > { %v1162_v37 = vsub.f32 %v3558_v15, %v1161_v26  ;;  %v3582_v38 = vsub.f32 %v535_v20, %v3569_v27  ;;  %v532_v45 = vpop.permute.xlu1 %531  ;;  %563 = vmatprep.subr.mxu0 %v3569_v27  ;;  %v3586_v48 = vand.u32 4294901760, %v534_v43  ;;  %v1156_v59 = vsub.f32 %v3556_v14, %v1155_v25 }
  0xe9   : > { %v536_v50 = vsel %vm533_vm6, %v530_v17, %v532_v45  ;;  %v542_v52 = vsel %vm533_vm6, %v532_v45, %v526_v30  ;;  %v640_v55 = vand.u32 4294901760, %v639_v31  ;;  %v2876_v2 = vpack.c.bf16 %v658_v23, %v646_v36 }
  0xea   : > { %v1163_v56 = vand.u32 4294901760, %v1162_v37  ;;  %v3590_v57 = vand.u32 4294901760, %v542_v52  ;;  %v3592_v58 = vand.u32 4294901760, %v536_v50  ;;  %v3598_v60 = vsub.f32 %v534_v43, %v3586_v48  ;;  %565 = vmatpush1.msra.mxu0 %v3586_v48 }
  0xeb   : > { %v2874_v61 = vpack.c.bf16 %v652_v32, %v640_v55  ;;  %v662_v62 = vand.u32 4294901760, %v3582_v38  ;;  %630 = vmatmul.mubr.f32.vlgmr.msra.gmra.mrb[0].mxu0 %v629_v28  ;;  %v1157_v5 = vand.u32 4294901760, %v1156_v59  ;;  %v2880_v45 = vpack.c.bf16 %v3504_v39, %v3525_v54 }
  0xec   : > { %v3603_v0 = vsub.f32 %v542_v52, %v3590_v57  ;;  %v3606_v1 = vsub.f32 %v536_v50, %v3592_v58  ;;  %1080 = vmatprep.subr.mxu1 %v3590_v57  ;;  %v668_v10 = vand.u32 4294901760, %v3598_v60  ;;  %v2900_v13 = vpack.c.bf16 %v1175_v34, %v1163_v56  ;;  %730 = vmatprep.mubr.f32.mxu0 %v3215_v29 }
  0xed   : > { %2875 = vmatprep.subr.bf16.mxu0 %v2874_v61  ;;  %1082 = vmatpush1.msra.mxu1 %v3592_v58  ;;  %v663_v17 = vsub.f32 %v3582_v38, %v662_v62  ;;  %v2898_v30 = vpack.c.bf16 %v1169_v33, %v1157_v5  ;;  %v2878_v33 = vpack.c.bf16 %v3512_v42, %v3544_v3 }
  0xee   : > { %v1185_v20 = vand.u32 4294901760, %v3606_v1  ;;  %2877 = vmatpush1.bf16.msra.mxu0 %v2876_v2  ;;  %1147 = vmatmul.mubr.f32.vlgmr.msra.gmra.mrb[0].mxu1 %v629_v28  ;;  %v1179_v31 = vand.u32 4294901760, %v3603_v0  ;;  %v669_v23 = vsub.f32 %v3598_v60, %v668_v10  ;;  %v2902_v50 = vpack.c.bf16 %v3510_v41, %v3556_v14 }
  0xef   : > { %v664_v32 = vand.u32 4294901760, %v663_v17  ;;  %1247 = vmatprep.mubr.f32.mxu1 %v3215_v29  ;;  %2899 = vmatprep.subr.bf16.mxu1 %v2898_v30  ;;  %v2904_v52 = vpack.c.bf16 %v3515_v44, %v3558_v15  ;;  %v2886_v55 = vpack.c.bf16 %v650_v51, %v638_v19  ;;  %v2910_v56 = vpack.c.bf16 %v1167_v49, %v1155_v25 }
  0xf0   : > { %v1186_v34 = vsub.f32 %v3606_v1, %v1185_v20  ;;  %v1180_v36 = vsub.f32 %v3603_v0, %v1179_v31  ;;  %2901 = vmatpush1.bf16.msra.mxu1 %v2900_v13  ;;  %v670_v28 = vand.u32 4294901760, %v669_v23  ;;  %v2912_v41 = vpack.c.bf16 %v1173_v53, %v1161_v26  ;;  %v1648_v26 = vld [vmem:[%s3917_s6] sm:$0xff] }
  0xf1   : > { %665 = vmatprep.subr.mxu0 %v664_v32 }
  0xf2   : > { %v1181_v37 = vand.u32 4294901760, %v1180_v36  ;;  %v1187_v43 = vand.u32 4294901760, %v1186_v34  ;;  %671 = vmatpush1.msra.mxu0 %v670_v28 }
  0xf3   : > { %732 = vmatmul.mubr.f32.vlgmr.msra.gmra.mrb[0].mxu0 %v3499_v35  ;;  %2879 = vmatprep.subr.bf16.mxu0 %v2878_v33 }
  0xf4   : > { %1182 = vmatprep.subr.mxu1 %v1181_v37  ;;  %2881 = vmatpush1.bf16.msra.mxu0 %v2880_v45 }
  0xf5   : > { %1188 = vmatpush1.msra.mxu1 %v1187_v43  ;;  %752 = vmatprep.subr.mxu0 %v3582_v38 }
  0xf6   : > { %1249 = vmatmul.mubr.f32.vlgmr.msra.gmra.mrb[0].mxu1 %v3499_v35  ;;  %2903 = vmatprep.subr.bf16.mxu1 %v2902_v50 }
  0xf7   : > { %2905 = vmatpush1.bf16.msra.mxu1 %v2904_v52  ;;  %814 = vmatprep.mubr.f32.mxu0 %v3215_v29  ;;  %v548_v39 = vpop.permute.xlu0 %547 }
  0xf8   : > { %1269 = vmatprep.subr.mxu1 %v3603_v0  ;;  %755 = vmatpush1.msra.mxu0 %v3598_v60 }
  0xf9   : > { %2883 = vmatprep.subr.bf16.mxu0 %v3546_v6  ;;  %1331 = vmatprep.mubr.f32.mxu1 %v3215_v29 }
  0xfb   : > { %1272 = vmatpush1.msra.mxu1 %v3606_v1  ;;  %817 = vmatmul.mubr.f32.vlgmr.msra.gmra.mrb[0].mxu0 %v3507_v40 }
  0xfc   : > { %2885 = vmatpush1.bf16.msra.mxu0 %v3548_v8  ;;  %2907 = vmatprep.subr.bf16.mxu1 %v3560_v18 }
  0xfd   : > { %832 = vmatprep.subr.mxu0 %v3569_v27  ;;  %893 = vmatprep.mubr.f32.mxu0 %v3215_v29 }
  0xfe   : > { %1334 = vmatmul.mubr.f32.vlgmr.msra.gmra.mrb[0].mxu1 %v3507_v40  ;;  %v2888_v40 = vpack.c.bf16 %v656_v47, %v644_v63 }
  0xff   : > { %2909 = vmatpush1.bf16.msra.mxu1 %v3565_v22  ;;  %1410 = vmatprep.mubr.f32.mxu1 %v3215_v29 }
 0x100   : > { %1349 = vmatprep.subr.mxu1 %v3590_v57  ;;  %834 = vmatpush1.msra.mxu0 %v3586_v48 }
 0x101   : > { %2887 = vmatprep.subr.bf16.mxu0 %v2886_v55 }
 0x103   : > { %1351 = vmatpush1.msra.mxu1 %v3592_v58  ;;  %897 = vmatmul.mubr.f32.vlgmr.msra.gmra.mrb[0].mxu0 %v3518_v46 }
 0x104   : > { %2911 = vmatprep.subr.bf16.mxu1 %v2910_v56  ;;  %2889 = vmatpush1.bf16.msra.mxu0 %v2888_v40 }
 0x105   : > { %922 = vmatprep.subr.mxu0 %v662_v62  ;;  %985 = vmatprep.mubr.f32.mxu0 %v3215_v29 }
 0x106   : > { %1414 = vmatmul.mubr.f32.vlgmr.msra.gmra.mrb[0].mxu1 %v3518_v46 }
 0x107   : > { %2913 = vmatpush1.bf16.msra.mxu1 %v2912_v41  ;;  %1502 = vmatprep.mubr.f32.mxu1 %v3215_v29 }
 0x108   : > { %1439 = vmatprep.subr.mxu1 %v1179_v31  ;;  %926 = vmatpush1.msra.mxu0 %v668_v10 }
 0x109   : > { %2891 = vmatprep.subr.bf16.mxu0 %v3546_v6 }
 0x10b   : > { %1443 = vmatpush1.msra.mxu1 %v1185_v20  ;;  %987 = vmatmul.mubr.f32.vlgmr.msra.gmra.mrb[0].mxu0 %v3499_v35 }
 0x10c   : > { %2915 = vmatprep.subr.bf16.mxu1 %v3560_v18  ;;  %2893 = vmatpush1.bf16.msra.mxu0 %v3548_v8 }
 0x10d   : > { %1002 = vmatprep.subr.mxu0 %v3569_v27  ;;  %1063 = vmatprep.mubr.f32.mxu0 %v3215_v29  ;;  %v1656_v27 = vsel %vm550_vm4, %v1648_v26, 0 }
 0x10e   : > { %1504 = vmatmul.mubr.f32.vlgmr.msra.gmra.mrb[0].mxu1 %v3499_v35  ;;  %v3728_v38 = vand.u32 4294901760, %v1656_v27 }
 0x10f   : > { %2917 = vmatpush1.bf16.msra.mxu1 %v3565_v22  ;;  %1580 = vmatprep.mubr.f32.mxu1 %v3215_v29 }
 0x110   : > { %1519 = vmatprep.subr.mxu1 %v3590_v57  ;;  %1004 = vmatpush1.msra.mxu0 %v3586_v48  ;;  %v3731_v59 = vsub.f32 %v1656_v27, %v3728_v38 }
 0x112   : > { %v3740_v5 = vand.u32 4294901760, %v3731_v59 }
 0x113   : > { %1521 = vmatpush1.msra.mxu1 %v3592_v58  ;;  %1065 = vmatmul.mubr.f32.vlgmr.msra.gmra.mrb[0].mxu0 %v3499_v35 }
 0x114   : > { %1728 = vmatprep.mubr.f32.mxu0 %v3215_v29  ;;  %v1732_v28 = vsub.f32 %v3731_v59, %v3740_v5 }
 0x116   : > { %1582 = vmatmul.mubr.f32.vlgmr.msra.gmra.mrb[0].mxu1 %v3499_v35 }
 0x117   : > { %1833 = vmatprep.mubr.f32.mxu1 %v3215_v29 }
 0x1e6   : > { %v1066_v42 = vpop.f32.mrb[0].mxu0 }
 0x1e7   : > { %v2966_v44 = vadd.f32 %v1066_v42, %v548_v39  ;;  %v1068_v46 = vpop.f32.mrb[1].mxu0 }
 0x1e8   : > { %v2967_v47 = vadd.f32 %v1068_v46, %v548_v39 }
 0x1e9   : > { %v1588_v49 = vadd.f32 %v2966_v44, %v3445_v4  ;;  %v1583_v51 = vpop.f32.mrb[0].mxu1  ;;  %v3764_v44 = vand.u32 4294901760, %v1732_v28 }
 0x1ea   : > { %v3697_v53 = vadd.f32 %v2967_v47, %v3453_v11  ;;  %v2968_v54 = vadd.f32 %v1583_v51, %v548_v39  ;;  %v1585_v63 = vpop.f32.mrb[1].mxu1 }
 0x1eb   : > { %vm1592_vm7 = vcmp.ge.f32.partialorder %v1588_v49, 0.0  ;;  %v1596_v3 = vmul.f32 0.1, %v1588_v49  ;;  %v2969_v6 = vadd.f32 %v1585_v63, %v548_v39 }
 0x1ec   : > { %vm1593_vm8 = vcmp.ge.f32.partialorder %v3697_v53, 0.0  ;;  %v1597_v35 = vmul.f32 0.1, %v3697_v53  ;;  %v3702_v8 = vadd.f32 %v2968_v54, %v3455_v12 }
 0x1ed   : > { %v1600_v14 = vsel %vm1592_vm7, %v1588_v49, %v1596_v3  ;;  %v1591_v15 = vadd.f32 %v2969_v6, %v3451_v9 }
 0x1ee   : > { %v1604_v4 = vmul.f32 %v1600_v14, %v3447_v7  ;;  %v1598_v11 = vmul.f32 0.1, %v3702_v8  ;;  %v1601_v19 = vsel %vm1593_vm8, %v3697_v53, %v1597_v35  ;;  %vm1594_vm10 = vcmp.ge.f32.partialorder %v3702_v8, 0.0 }
 0x1ef   : > { %vm1595_vm9 = vcmp.ge.f32.partialorder %v1591_v15, 0.0  ;;  %v1599_v18 = vmul.f32 0.1, %v1591_v15  ;;  %v1605_v12 = vmul.f32 %v1601_v19, %v3468_v21 }
 0x1f0   : > { %1615 = vrot.lane.b32.xlu1 %v1604_v4, %s3218_s25  ;;  %v1602_v9 = vsel %vm1594_vm10, %v3702_v8, %v1598_v11  ;;  %v1664_v58 = vand.u32 4294901760, %v1604_v4 }
 0x1f1   : > { %v1603_v22 = vsel %vm1595_vm9, %v1591_v15, %v1599_v18  ;;  %v3716_v7 = vmul.f32 %v1602_v9, %v3475_v24  ;;  %v1662_v48 = vand.u32 4294901760, %v1605_v12 }
 0x1f2   : > { %v3710_v25 = vmul.f32 %v1603_v22, %v3461_v16  ;;  %v1649_v16 = vld [vmem:[%s3918_s7] sm:$0xff]  ;;  %v3736_v1 = vsub.f32 %v1604_v4, %v1664_v58 }
 0x1f3   : > { %v3733_v60 = vsub.f32 %v1605_v12, %v1662_v48  ;;  %v2175_v9 = vand.u32 4294901760, %v3716_v7 }
 0x1f4   : > { %1609 = vrot.lane.b32.xlu0 %v3710_v25, %s3218_s25  ;;  %1617 = vrot.lane.b32.xlu1 %v1605_v12, %s3218_s25  ;;  %v1759_v33 = vand.u32 4294901760, %v3736_v1 }
 0x1f5   : > { %v1753_v17 = vand.u32 4294901760, %v3733_v60 }
 0x1f6   : > { %v1760_v46 = vsub.f32 %v3736_v1, %v1759_v33 }
 0x1f7   : > { %v1754_v50 = vsub.f32 %v3733_v60, %v1753_v17 }
 0x1f8   : > { %1634 = vrot.lane.b32.xlu0 %v3716_v7, %s3219_s26  ;;  %1632 = vrot.lane.b32.xlu1 %v1605_v12, %s3219_s26  ;;  %v1761_v19 = vand.u32 4294901760, %v1760_v46  ;;  %v2173_v12 = vand.u32 4294901760, %v3710_v25 }
 0x1f9   : > { %v1755_v51 = vand.u32 4294901760, %v1754_v50 }
 0x1fc   : > { %1619 = vrot.lane.b32.xlu0 %v3716_v7, %s3218_s25  ;;  %1630 = vrot.lane.b32.xlu1 %v1604_v4, %s3219_s26  ;;  %s3128_s25 = sshll.u32 %s3220_s30, 4  ;;  %s3129_s25 = int_to_ptr.vmem [resolvable:$false] %s3128_s25 }
 0x1fd   : > { %p3131_p12 = scmp.lt.s32.totalorder %s3864_s13, %s3129_s25 }
 0x200   : > { %1652 = vperm.xlu0 %3063, %v1649_v16   ;;  %1636 = vrot.lane.b32.xlu1 %v3710_v25, %s3219_s26  ;;  %s3130_s26 = scalar_lea.vmem %s3129_s25, 512 }
 0x201   : > { %p3132_p1 = scmp.lt.s32.totalorder %s3130_s26, %s3124_s23 }
 0x203   : > { %p3133_p2 = por %p3132_p1, %p3131_p12 }
 0x205   : > { %p3134_p9 = pnand %p3133_p2, %p3127_p10 }
 0x262   : > { %v1616_v57 = vpop.permute.xlu1 %1615 }
 0x266   : > { %v1610_v61 = vpop.permute.xlu0 %1609  ;;  %v1618_v62 = vpop.permute.xlu1 %1617 }
 0x267   : > { %v1629_v0 = vsel %vm1621_vm11, %v1610_v61, %v1616_v57  ;;  %v1622_v2 = vsel %vm1621_vm11, %v1616_v57, %v1618_v62 }
 0x268   : > { %v1660_v10 = vand.u32 4294901760, %v1629_v0  ;;  %v1658_v13 = vand.u32 4294901760, %v1622_v2 }
 0x26a   : > { %v3743_v20 = vsub.f32 %v1629_v0, %v1660_v10  ;;  %v1740_v30 = vsub.f32 %v1622_v2, %v1658_v13  ;;  %v1635_v31 = vpop.permute.xlu0 %1634  ;;  %v1633_v23 = vpop.permute.xlu1 %1632  ;;  %v3745_v32 = vpack.c.bf16 %v1662_v48, %v1658_v13  ;;  %v3747_v34 = vpack.c.bf16 %v1664_v58, %v1660_v10 }
 0x26b   : > { %v1640_v36 = vsel %vm1638_vm12, %v1633_v23, %v1635_v31  ;;  %v3788_v2 = vsub.f32 %v3710_v25, %v2173_v12  ;;  %v3791_v10 = vsub.f32 %v3716_v7, %v2175_v9 }
 0x26c   : > { %v1747_v37 = vand.u32 4294901760, %v3743_v20  ;;  %v1741_v43 = vand.u32 4294901760, %v1740_v30  ;;  %v3754_v45 = vand.u32 4294901760, %v1640_v36  ;;  %2919 = vmatprep.subr.bf16.mxu0 %v3745_v32  ;;  %v2926_v63 = vpack.c.bf16 %v3733_v60, %v1740_v30 }
 0x26d   : > { %2921 = vmatpush1.bf16.msra.mxu0 %v3747_v34  ;;  %v2928_v35 = vpack.c.bf16 %v3736_v1, %v3743_v20  ;;  %v2264_v25 = vand.u32 4294901760, %v3788_v2  ;;  %v2270_v7 = vand.u32 4294901760, %v3791_v10 }
 0x26e   : > { %v1748_v52 = vsub.f32 %v3743_v20, %v1747_v37  ;;  %v1764_v55 = vsub.f32 %v1640_v36, %v3754_v45  ;;  %v1620_v56 = vpop.permute.xlu0 %1619  ;;  %v1631_v40 = vpop.permute.xlu1 %1630  ;;  %1667 = vmatprep.subr.mxu0 %v3754_v45  ;;  %v1742_v41 = vsub.f32 %v1740_v30, %v1741_v43  ;;  %v2936_v13 = vpack.c.bf16 %v1759_v33, %v1747_v37 }
 0x26f   : > { %v1624_v39 = vsel %vm1621_vm11, %v1620_v56, %v1610_v61  ;;  %v1639_v42 = vsel %vm1638_vm12, %v1631_v40, %v1633_v23  ;;  %v1623_v47 = vsel %vm1621_vm11, %v1618_v62, %v1620_v56  ;;  %v2934_v61 = vpack.c.bf16 %v1753_v17, %v1741_v43 }
 0x270   : > { %v3768_v49 = vand.u32 4294901760, %v1639_v42  ;;  %v1749_v54 = vand.u32 4294901760, %v1748_v52  ;;  %v1743_v3 = vand.u32 4294901760, %v1742_v41  ;;  %v1765_v6 = vand.u32 4294901760, %v1764_v55 }
 0x271   : > { %v2169_v14 = vand.u32 4294901760, %v1624_v39  ;;  %v2171_v11 = vand.u32 4294901760, %v1623_v47  ;;  %v2265_v43 = vsub.f32 %v3788_v2, %v2264_v25  ;;  %v2271_v52 = vsub.f32 %v3791_v10, %v2270_v7 }
 0x272   : > { %v1770_v15 = vsub.f32 %v1639_v42, %v3768_v49  ;;  %v1637_v4 = vpop.permute.xlu1 %1636  ;;  %1669 = vmatpush1.msra.mxu0 %v3768_v49  ;;  %v2922_v18 = vpack.c.bf16 %v1755_v51, %v1743_v3  ;;  %v2924_v26 = vpack.c.bf16 %v1761_v19, %v1749_v54  ;;  %v1766_v27 = vsub.f32 %v1764_v55, %v1765_v6 }
 0x273   : > { %1734 = vmatmul.mubr.f32.vlgmr.msra.gmra.mrb[2].mxu0 %v3764_v44  ;;  %2927 = vmatprep.subr.bf16.mxu0 %v2926_v63  ;;  %v1647_v16 = vsel %vm1638_vm12, %v1637_v4, %v1631_v40  ;;  %v3780_v48 = vsub.f32 %v1624_v39, %v2169_v14  ;;  %v3782_v58 = vsub.f32 %v1623_v47, %v2171_v11  ;;  %v2266_v39 = vand.u32 4294901760, %v2265_v43 }
 0x274   : > { %v1771_v22 = vand.u32 4294901760, %v1770_v15  ;;  %2929 = vmatpush1.bf16.msra.mxu0 %v2928_v35  ;;  %1916 = vmatprep.mubr.f32.mxu0 %v3215_v29  ;;  %v1767_v60 = vand.u32 4294901760, %v1766_v27  ;;  %v1641_v62 = vsel %vm1638_vm12, %v1635_v31, %v1637_v4  ;;  %v3785_v0 = vand.u32 4294901760, %v1647_v16 }
 0x275   : > { %2923 = vmatprep.subr.bf16.mxu1 %v2922_v18  ;;  %1854 = vmatprep.subr.mxu0 %v1764_v55  ;;  %v2252_v20 = vand.u32 4294901760, %v3780_v48  ;;  %v2258_v17 = vand.u32 4294901760, %v3782_v58  ;;  %v3796_v30 = vand.u32 4294901760, %v1641_v62  ;;  %v3808_v23 = vpack.c.bf16 %v2173_v12, %v2169_v14 }
 0x276   : > { %v1772_v57 = vsub.f32 %v1770_v15, %v1771_v22  ;;  %2925 = vmatpush1.bf16.msra.mxu1 %v2924_v26  ;;  %v3799_v31 = vsub.f32 %v1647_v16, %v3785_v0  ;;  %v2944_v28 = vpack.c.bf16 %v2175_v9, %v2171_v11  ;;  %v2950_v41 = vpack.c.bf16 %v3788_v2, %v3780_v48 }
 0x277   : > { %1768 = vmatprep.subr.mxu1 %v1767_v60  ;;  %v2253_v36 = vsub.f32 %v3780_v48, %v2252_v20  ;;  %v2259_v33 = vsub.f32 %v3782_v58, %v2258_v17  ;;  %v2281_v37 = vsub.f32 %v1641_v62, %v3796_v30  ;;  %v2272_v46 = vand.u32 4294901760, %v2271_v52 }
 0x278   : > { %1857 = vmatpush1.msra.mxu0 %v1770_v15  ;;  %v1773_v1 = vand.u32 4294901760, %v1772_v57  ;;  %v2276_v50 = vand.u32 4294901760, %v3799_v31  ;;  %v2958_v54 = vpack.c.bf16 %v2264_v25, %v2252_v20  ;;  %v2960_v63 = vpack.c.bf16 %v2270_v7, %v2258_v17 }
 0x279   : > { %2935 = vmatprep.subr.bf16.mxu0 %v2934_v61  ;;  %1919 = vmatmul.mubr.f32.vlgmr.msra.gmra.mrb[4].mxu0 %v3731_v59  ;;  %v2254_v55 = vand.u32 4294901760, %v2253_v36  ;;  %v2260_v56 = vand.u32 4294901760, %v2259_v33  ;;  %v2282_v40 = vand.u32 4294901760, %v2281_v37 }
 0x27a   : > { %1774 = vmatpush1.msra.mxu1 %v1773_v1  ;;  %2937 = vmatpush1.bf16.msra.mxu0 %v2936_v13  ;;  %v2277_v42 = vsub.f32 %v3799_v31, %v2276_v50 }
 0x27b   : > { %1835 = vmatmul.mubr.f32.vlgmr.msra.gmra.mrb[2].mxu1 %v3728_v38  ;;  %2931 = vmatprep.subr.bf16.mxu1 %v3745_v32  ;;  %v2948_v47 = vpack.c.bf16 %v2272_v46, %v2260_v56 }
 0x27c   : > { %2022 = vmatprep.subr.mxu0 %v1765_v6  ;;  %2933 = vmatpush1.bf16.msra.mxu1 %v3747_v34  ;;  %v2278_v51 = vand.u32 4294901760, %v2277_v42 }
 0x27d   : > { %1933 = vmatprep.subr.mxu1 %v3754_v45  ;;  %2085 = vmatprep.mubr.f32.mxu0 %v3215_v29 }
 0x27e   : > { %2026 = vmatpush1.msra.mxu0 %v1771_v22  ;;  %1994 = vmatprep.mubr.f32.mxu1 %v3215_v29 }
 0x27f   : > { %2943 = vmatprep.subr.bf16.mxu0 %v3808_v23  ;;  %2087 = vmatmul.mubr.f32.vlgmr.msra.gmra.mrb[6].mxu0 %v3728_v38  ;;  %v1653_v6 = vpop.permute.xlu0 %1652 }
 0x280   : > { %1935 = vmatpush1.msra.mxu1 %v3768_v49  ;;  %2945 = vmatpush1.bf16.msra.mxu0 %v2944_v28 }
 0x281   : > { %1998 = vmatmul.mubr.f32.vlgmr.msra.gmra.mrb[4].mxu1 %v3740_v5  ;;  %2939 = vmatprep.subr.bf16.mxu1 %v3745_v32  ;;  %v2952_v32 = vpack.c.bf16 %v3791_v10, %v3782_v58 }
 0x282   : > { %2178 = vmatprep.subr.mxu0 %v3785_v0  ;;  %2941 = vmatpush1.bf16.msra.mxu1 %v3747_v34  ;;  %v2946_v34 = vpack.c.bf16 %v2266_v39, %v2254_v55 }
 0x283   : > { %2101 = vmatprep.subr.mxu1 %v3754_v45  ;;  %2239 = vmatprep.mubr.f32.mxu0 %v3215_v29  ;;  %v2283_v45 = vsub.f32 %v2281_v37, %v2282_v40 }
 0x284   : > { %2180 = vmatpush1.msra.mxu0 %v3796_v30  ;;  %2162 = vmatprep.mubr.f32.mxu1 %v3215_v29 }
 0x285   : > { %2245 = vmatmul.mubr.f32.vlgmr.msra.gmra.mrb[8].mxu0 %v3764_v44  ;;  %2951 = vmatprep.subr.bf16.mxu0 %v2950_v41  ;;  %v2284_v44 = vand.u32 4294901760, %v2283_v45 }
 0x286   : > { %2103 = vmatpush1.msra.mxu1 %v3768_v49  ;;  %2953 = vmatpush1.bf16.msra.mxu0 %v2952_v32 }
 0x287   : > { %2164 = vmatmul.mubr.f32.vlgmr.msra.gmra.mrb[6].mxu1 %v3728_v38  ;;  %2947 = vmatprep.subr.bf16.mxu1 %v2946_v34 }
 0x288   : > { %2365 = vmatprep.subr.mxu0 %v3799_v31  ;;  %2949 = vmatpush1.bf16.msra.mxu1 %v2948_v47 }
 0x289   : > { %2279 = vmatprep.subr.mxu1 %v2278_v51  ;;  %2427 = vmatprep.mubr.f32.mxu0 %v3215_v29 }
 0x28a   : > { %2368 = vmatpush1.msra.mxu0 %v2281_v37  ;;  %2344 = vmatprep.mubr.f32.mxu1 %v3215_v29 }
 0x28b   : > { %2959 = vmatprep.subr.bf16.mxu0 %v2958_v54  ;;  %2430 = vmatmul.mubr.f32.vlgmr.msra.gmra.mrb[10].mxu0 %v3731_v59 }
 0x28c   : > { %2285 = vmatpush1.msra.mxu1 %v2284_v44  ;;  %2961 = vmatpush1.bf16.msra.mxu0 %v2960_v63 }
 0x28d   : > { %2346 = vmatmul.mubr.f32.vlgmr.msra.gmra.mrb[8].mxu1 %v3728_v38  ;;  %2955 = vmatprep.subr.bf16.mxu1 %v3808_v23 }
 0x28e   : > { %2533 = vmatprep.subr.mxu0 %v2276_v50  ;;  %2957 = vmatpush1.bf16.msra.mxu1 %v2944_v28 }
 0x28f   : > { %2444 = vmatprep.subr.mxu1 %v3785_v0  ;;  %2505 = vmatprep.mubr.f32.mxu1 %v3215_v29 }
 0x290   : > { %2537 = vmatpush1.msra.mxu0 %v2282_v40  ;;  %2596 = vmatprep.mubr.f32.mxu0 %v3215_v29 }
 0x291   : > { %2598 = vmatmul.mubr.f32.vlgmr.msra.gmra.mrb[12].mxu0 %v3728_v38 }
 0x292   : > { %2446 = vmatpush1.msra.mxu1 %v3796_v30 }
 0x293   : > { %2509 = vmatmul.mubr.f32.vlgmr.msra.gmra.mrb[10].mxu1 %v3740_v5  ;;  %2963 = vmatprep.subr.bf16.mxu1 %v3808_v23 }
 0x294   : > { %2965 = vmatpush1.bf16.msra.mxu1 %v2944_v28  ;;  %2673 = vmatprep.mubr.f32.mxu1 %v3215_v29 }
 0x295   : > { %2612 = vmatprep.subr.mxu1 %v3785_v0 }
 0x298   : > { %2614 = vmatpush1.msra.mxu1 %v3796_v30 }
 0x299   : > { %2675 = vmatmul.mubr.f32.vlgmr.msra.gmra.mrb[12].mxu1 %v3728_v38 }
 0x346   : > { %v1735_v59 = vpop.f32.mrb[2].mxu0 }
 0x347   : > { %v1736_v49 = vpop.f32.mrb[3].mxu0 }
 0x348   : > { %v1737_v14 = vadd.f32 %v1736_v49, %v1653_v6 }
 0x34c   : > { %v1920_v3 = vpop.f32.mrb[4].mxu0 }
 0x34d   : > { %v1921_v35 = vpop.f32.mrb[5].mxu0 }
 0x34e   : > { %v1836_v15 = vpop.f32.mrb[2].mxu1 }
 0x34f   : > { %v1837_v4 = vpop.f32.mrb[3].mxu1 }
 0x350   : > { %v1838_v5 = vadd.f32 %v1837_v4, %v1737_v14 }
 0x352   : > { %v1922_v11 = vadd.f32 %v1921_v35, %v1838_v5  ;;  %v2088_v18 = vpop.f32.mrb[6].mxu0 }
 0x353   : > { %v2089_v19 = vpop.f32.mrb[7].mxu0 }
 0x354   : > { %v1999_v22 = vpop.f32.mrb[4].mxu1 }
 0x355   : > { %v2000_v29 = vpop.f32.mrb[5].mxu1 }
 0x356   : > { %v2001_v12 = vadd.f32 %v2000_v29, %v1922_v11 }
 0x358   : > { %v2090_v9 = vadd.f32 %v2089_v19, %v2001_v12  ;;  %v2246_v16 = vpop.f32.mrb[8].mxu0 }
 0x359   : > { %v2248_v26 = vpop.f32.mrb[9].mxu0  ;;  %v2247_v60 = vadd.f32 %v2246_v16, %v1653_v6 }
 0x35a   : > { %v2165_v38 = vpop.f32.mrb[6].mxu1 }
 0x35b   : > { %v2166_v27 = vpop.f32.mrb[7].mxu1 }
 0x35c   : > { %v2167_v48 = vadd.f32 %v2166_v27, %v2090_v9 }
 0x35e   : > { %v2680_v57 = vadd.f32 %v2167_v48, %v3697_v53  ;;  %v2431_v58 = vpop.f32.mrb[10].mxu0 }
 0x35f   : > { %v2433_v61 = vpop.f32.mrb[11].mxu0 }
 0x360   : > { %v2682_v62 = vmul.f32 %v2680_v57, %v3468_v21  ;;  %v2347_v0 = vpop.f32.mrb[8].mxu1 }
 0x361   : > { %v2348_v1 = vadd.f32 %v2347_v0, %v2247_v60  ;;  %v2349_v2 = vpop.f32.mrb[9].mxu1 }
 0x362   : > { %2684 = vst [vmem:[%s428_s22] sm:$0xff] %v2682_v62 }
 0x363   : > { %v2432_v10 = vadd.f32 %v2431_v58, %v2348_v1 }
 0x364   : > { %v2599_v13 = vpop.f32.mrb[12].mxu0 }
 0x365   : > { %v2601_v20 = vpop.f32.mrb[13].mxu0 }
 0x366   : > { %v2510_v17 = vpop.f32.mrb[10].mxu1 }
 0x367   : > { %v2511_v30 = vadd.f32 %v2510_v17, %v2432_v10  ;;  %v2512_v31 = vpop.f32.mrb[11].mxu1 }
 0x369   : > { %v2600_v53 = vadd.f32 %v2599_v13, %v2511_v30 }
 0x36c   : > { %v2676_v25 = vpop.f32.mrb[12].mxu1 }
 0x36d   : > { %v2677_v7 = vadd.f32 %v2676_v25, %v2600_v53  ;;  %v2678_v23 = vpop.f32.mrb[13].mxu1 }
 0x36f   : > { %v2681_v21 = vadd.f32 %v2677_v7, %v3702_v8 }
 0x371   : > { %v2683_v36 = vmul.f32 %v2681_v21, %v3475_v24 }
 0x373   : > { %2685 = vst [vmem:[%s428_s22 + $0x8] sm:$0xff] %v2683_v36 }
 0x374   : > { %3137 = shalt.err (!%p3134_p9)
}
 0x375   : > { %s3138_s12 = scalar_lea.hbm %s3862_s0, 256  ;;  %s3142_s11 = scalar_lea.hbm %s3919_s8, 512 }
 0x376   : > { %p3139_p11 = scmp.ne.s32.totalorder %s3862_s0, %s3138_s12  ;;  %p3143_p13 = scmp.lt.u32.totalorder %s3862_s0, %s3919_s8 }
 0x377   : > { %p3144_p8 = scmp.lt.u32.totalorder %s3142_s11, %s3138_s12  ;;  %p3146_p5 = scmp.lt.u32.totalorder %s3138_s12, %s3862_s0 }
 0x378   : > { %p3140_p3 = pnand %p3139_p11, %p3942_p7 }
 0x379   : > { %p3145_p0 = por %p3144_p8, %p3143_p13 }
 0x37a   : > { %p3141_p6 = pneg %p3140_p3 }
 0x37b   : > { %p3147_p4 = por %p3146_p5, %p3145_p0 }
 0x37d   : > { %p3148_p10 = pnand %p3147_p4, %p3141_p6 }
 0x37f   : > { %3151 = shalt.err (!%p3148_p10)
}
 0x380   : > { %2994 = dma.vmem_to_hbm [thread:$0]  (%p3942_p7), %s3864_s13, 256, %s3862_s0, %s2687_s14  }
 0x381 PF: > { %s2715_s17 = sand.u32 1, %s3190_s27   ;;  %p3943_p12 = scmp.ne.s32.totalorder %s3932_s20, 0 }
 0x382   : > { %p3944_p1 = scmp.ge.s32.totalorder %s3210_s10, 2  ;;  %s2716_s16 = scalar_lea.sflag [#allocation4], %s2715_s17 }
 0x384   : > { %p3004_p2 = pnand %p3944_p1, %p3943_p12 }
 0x386   : > { %3185 = dma.done.wait (!%p3004_p2), %s2716_s16, 256  }
 0x387   : > { %3187 = vsyncadd (!%p3004_p2), %s2716_s16, 4294967040  ;;  %s27_s10 = sadd.s32 1, %s3210_s10   ;;  %s3945_s30 = sld [smem:[#allocation11_spill]] }
 0x388   : > { %p24_p9 = scmp.ge.s32.totalorder %s27_s10, 4   ;;  %s3946_s9 = sld [smem:[#allocation12_spill]] }
 0x389   : > { %s3947_s27 = smov %s3194_s28  ;;  %s3948_s28 = smov %s3198_s29 }
 0x38a   : > { %s3949_s29 = smov %s3322_s19  ;;  %26 = sbr.rel (!%p24_p9) target bundleno = 10 (0xa), region = 116 }
 0x391   :  { %2721 = vsyncpa [#allocation3], 1 }
 0x392   :  { %2723 = vsyncpa [#allocation3 + $0x1], 1 }
 0x393   :  { %2724 = vsyncpa [#allocation6], 1 }
 0x394   :  { %2726 = vsyncpa [#allocation6 + $0x1], 1 }
 0x395   :  { %2727 = vsyncpa [#allocation4], 1 }
 0x396   :  { %2729 = vsyncpa [#allocation4 + $0x1], 1 }

</bundles_post_ra>
